<compile_context>
chip_gen: v5e
topology: v5e:2x2
jax: 0.10.0
libtpu: 0.0.40
codegen_flags: <defaults>
</compile_context>

<pallas_src>
import jax
import jax.numpy as jnp
from jax.experimental import pallas as pl
from jax.experimental.pallas import tpu as pltpu


HIDDEN = (128, 64, 32)


def _round_up(x, m):
    return ((x + m - 1) // m) * m


def _value_net_kernel(x_ref,
                      w1_ref, b1_ref,
                      w2_ref, b2_ref,
                      w3_ref, b3_ref,
                      w4_ref, b4_ref,
                      o_ref):
    x = x_ref[...]                                                    # (V, TB) bf16

    # Layers 1..3: W @ x on the MXU (bf16 in, f32 accumulate), f32 bias + ReLU.
    h1 = jnp.dot(w1_ref[...], x, preferred_element_type=jnp.float32) + b1_ref[...]
    h1 = jnp.maximum(h1, 0.0).astype(jnp.bfloat16)                    # (128, TB)

    h2 = jnp.dot(w2_ref[...], h1, preferred_element_type=jnp.float32) + b2_ref[...]
    h2 = jnp.maximum(h2, 0.0).astype(jnp.bfloat16)                    # (64, TB)

    h3 = jnp.dot(w3_ref[...], h2, preferred_element_type=jnp.float32) + b3_ref[...]
    h3 = jnp.maximum(h3, 0.0)                                         # (32, TB) f32

    # Head 32 -> 1: VPU multiply + XLU sublane reduce instead of an M=1 MXU pass,
    # scalar bias read from SMEM.
    out = jnp.sum(h3 * w4_ref[...], axis=0, keepdims=True) + b4_ref[0]  # (1, TB)
    o_ref[...] = out.astype(o_ref.dtype)


def prepare_params(params):
    """One-time layout/dtype prep (hoisted out of the per-call path).

    Input: PyTorch nn.Linear layout, wN: (out, in) f32, bN: (out,) f32.
    """
    return {
        "w1": params["w1"].astype(jnp.bfloat16),                 # (128, V)
        "b1": params["b1"].reshape(-1, 1).astype(jnp.float32),   # (128, 1)
        "w2": params["w2"].astype(jnp.bfloat16),                 # (64, 128)
        "b2": params["b2"].reshape(-1, 1).astype(jnp.float32),   # (64, 1)
        "w3": params["w3"].astype(jnp.bfloat16),                 # (32, 64)
        "b3": params["b3"].reshape(-1, 1).astype(jnp.float32),   # (32, 1)
        "w4": params["w4"].reshape(-1, 1).astype(jnp.float32),   # (32, 1)  VPU head
        "b4": params["b4"].reshape(1).astype(jnp.float32),       # (1,)     SMEM scalar
    }


def value_network_sac_forward(state, prepared, *, max_batch_tile=1024):
    """state: (B, vector_size) f32; prepared: output of prepare_params()."""
    B, V = state.shape

    # Batch tile: multiple of 128 (lane width), large enough to amortize the
    # ~0.35us per-grid-step overhead, small enough to keep intermediates cheap
    # on every generation (v5e/v6e/v7x VMEM limits).
    TB = min(max_batch_tile, _round_up(B, 128))
    B_pad = _round_up(B, TB)

    # Feature-major input: (V, B_pad), batch on the lane axis, bf16 for the MXU.
    x = jnp.transpose(state.astype(jnp.bfloat16))                 # (V, B)
    if B_pad != B:
        x = jnp.pad(x, ((0, 0), (0, B_pad - B)))

    w1, b1 = prepared["w1"], prepared["b1"]
    w2, b2 = prepared["w2"], prepared["b2"]
    w3, b3 = prepared["w3"], prepared["b3"]
    w4, b4 = prepared["w4"], prepared["b4"]

    def resident(shape):  # weights/biases: same block for every grid step
        return pl.BlockSpec(shape, lambda i: (0, 0))

    flops = 2 * B_pad * (V * HIDDEN[0] + HIDDEN[0] * HIDDEN[1]
                         + HIDDEN[1] * HIDDEN[2] + HIDDEN[2])
    bytes_accessed = (2 * B_pad * V + 4 * B_pad
                      + sum(int(a.size) * a.dtype.itemsize
                            for a in (w1, b1, w2, b2, w3, b3, w4, b4)))

    out_padded = pl.pallas_call(
        _value_net_kernel,
        out_shape=jax.ShapeDtypeStruct((1, B_pad), jnp.float32),
        grid=(B_pad // TB,),
        in_specs=[
            pl.BlockSpec((V, TB), lambda i: (0, i)),              # x tile, pipelined
            resident(w1.shape), resident(b1.shape),
            resident(w2.shape), resident(b2.shape),
            resident(w3.shape), resident(b3.shape),
            resident(w4.shape),
            pl.BlockSpec(memory_space=pltpu.MemorySpace.SMEM),    # b4 scalar
        ],
        out_specs=pl.BlockSpec((1, TB), lambda i: (0, i)),        # lane-dense output
        compiler_params=pltpu.CompilerParams(
            dimension_semantics=("parallel",)),                   # 2 TCs on v7x
        cost_estimate=pl.CostEstimate(flops=flops, transcendentals=0,
                                      bytes_accessed=bytes_accessed),
    )(x, w1, b1, w2, b2, w3, b3, w4, b4)

    return jnp.transpose(out_padded[:, :B])                       # (B, 1) f32


def init_params(key, vector_size):
    """Deterministic synthetic init with PyTorch nn.Linear shapes (out, in)."""
    hs = HIDDEN
    sizes = [(hs[0], vector_size), (hs[1], hs[0]), (hs[2], hs[1]), (1, hs[2])]
    params = {}
    for i, (out_f, in_f) in enumerate(sizes, start=1):
        key, kw, kb = jax.random.split(key, 3)
        bound = 1.0 / jnp.sqrt(in_f)
        params[f"w{i}"] = jax.random.uniform(
            kw, (out_f, in_f), jnp.float32, -bound, bound)
        params[f"b{i}"] = jax.random.uniform(
            kb, (out_f,), jnp.float32, -bound, bound)
    return params


def reference_forward_f32(state, params):
    x = state
    x = jnp.maximum(x @ params["w1"].T + params["b1"], 0.0)
    x = jnp.maximum(x @ params["w2"].T + params["b2"], 0.0)
    x = jnp.maximum(x @ params["w3"].T + params["b3"], 0.0)
    return x @ params["w4"].T + params["b4"]


def reference_forward_bf16(state, params):
    """Mirrors the kernel's numerics: bf16 matmul operands, f32 accumulation."""
    def lin(h_bf16, w, b):
        return jnp.dot(h_bf16, w.astype(jnp.bfloat16).T,
                       preferred_element_type=jnp.float32) + b
    h = state.astype(jnp.bfloat16)
    h = jnp.maximum(lin(h, params["w1"], params["b1"]), 0.0).astype(jnp.bfloat16)
    h = jnp.maximum(lin(h, params["w2"], params["b2"]), 0.0).astype(jnp.bfloat16)
    h = jnp.maximum(lin(h, params["w3"], params["b3"]), 0.0)          # f32
    return h @ params["w4"].T + params["b4"]                          # f32 head


if __name__ == "__main__":
    key = jax.random.PRNGKey(0)
    vector_size = 8
    batch = 2

    key, kp, kx = jax.random.split(key, 3)
    params = init_params(kp, vector_size)
    state = jax.random.normal(kx, (batch, vector_size), jnp.float32)

    prepared = prepare_params(params)
    out = value_network_sac_forward(state, prepared)
    out = jax.block_until_ready(out)

    ref_bf16 = reference_forward_bf16(state, params)
    ref_f32 = reference_forward_f32(state, params)

    assert out.shape == (batch, 1), out.shape
    assert jnp.allclose(out, ref_bf16, atol=5e-3, rtol=5e-3), (out, ref_bf16)
    assert jnp.allclose(out, ref_f32, atol=5e-2), (out, ref_f32)

    print("KERNEL_OK")
</pallas_src>

<mosaic_0001>
module attributes {stable_mosaic.version = 11 : i64} {
  func.func @_value_net_kernel(%arg0: i32, %arg1: memref<8x128xbf16, #tpu.memory_space<vmem>>, %arg2: memref<128x8xbf16, #tpu.memory_space<vmem>>, %arg3: memref<128x1xf32, #tpu.memory_space<vmem>>, %arg4: memref<64x128xbf16, #tpu.memory_space<vmem>>, %arg5: memref<64x1xf32, #tpu.memory_space<vmem>>, %arg6: memref<32x64xbf16, #tpu.memory_space<vmem>>, %arg7: memref<32x1xf32, #tpu.memory_space<vmem>>, %arg8: memref<32x1xf32, #tpu.memory_space<vmem>>, %arg9: memref<1xf32, #tpu.memory_space<smem>>, %arg10: memref<1x128xf32, #tpu.memory_space<vmem>>) attributes {dimension_semantics = [#tpu.dimension_semantics<parallel>], iteration_bounds = array<i64: 1>, scalar_prefetch = 0 : i64, scratch_operands = 0 : i64, tpu.core_type = #tpu.core_type<tc>, window_params = [{transform_indices = @transform_0, window_bounds = array<i64: 8, 128>}, {pipeline_mode = #tpu.pipeline_mode<synchronous>, transform_indices = @transform_1, window_bounds = array<i64: 128, 8>}, {pipeline_mode = #tpu.pipeline_mode<synchronous>, transform_indices = @transform_2, window_bounds = array<i64: 128, 1>}, {pipeline_mode = #tpu.pipeline_mode<synchronous>, transform_indices = @transform_3, window_bounds = array<i64: 64, 128>}, {pipeline_mode = #tpu.pipeline_mode<synchronous>, transform_indices = @transform_4, window_bounds = array<i64: 64, 1>}, {pipeline_mode = #tpu.pipeline_mode<synchronous>, transform_indices = @transform_5, window_bounds = array<i64: 32, 64>}, {pipeline_mode = #tpu.pipeline_mode<synchronous>, transform_indices = @transform_6, window_bounds = array<i64: 32, 1>}, {pipeline_mode = #tpu.pipeline_mode<synchronous>, transform_indices = @transform_7, window_bounds = array<i64: 32, 1>}, {transform_indices = @transform_8, window_bounds = array<i64: 1>}, {transform_indices = @transform_9, window_bounds = array<i64: 1, 128>}]} {
    %c0 = arith.constant 0 : index
    %c0_0 = arith.constant 0 : index
    %0 = vector.load %arg1[%c0, %c0_0] : memref<8x128xbf16, #tpu.memory_space<vmem>>, vector<8x128xbf16>
    %c0_1 = arith.constant 0 : index
    %c0_2 = arith.constant 0 : index
    %1 = vector.load %arg2[%c0_1, %c0_2] : memref<128x8xbf16, #tpu.memory_space<vmem>>, vector<128x8xbf16>
    %cst = arith.constant dense<0.000000e+00> : vector<128x128xf32>
    %2 = tpu.matmul %1, %0, %cst {dimension_numbers = #tpu.dot_dimension_numbers<[1], [0], [0], [1], [0, 0, 1, 1], [], []>} : vector<128x8xbf16>, vector<8x128xbf16>, vector<128x128xf32> -> vector<128x128xf32>
    %c0_3 = arith.constant 0 : index
    %c0_4 = arith.constant 0 : index
    %3 = vector.load %arg3[%c0_3, %c0_4] : memref<128x1xf32, #tpu.memory_space<vmem>>, vector<128x1xf32>
    %4 = vector.broadcast %3 : vector<128x1xf32> to vector<128x128xf32>
    %5 = arith.addf %2, %4 : vector<128x128xf32>
    %cst_5 = arith.constant 0.000000e+00 : f32
    %6 = vector.broadcast %cst_5 : f32 to vector<128x128xf32>
    %7 = arith.maximumf %5, %6 : vector<128x128xf32>
    %8 = arith.truncf %7 : vector<128x128xf32> to vector<128x128xbf16>
    %c0_6 = arith.constant 0 : index
    %c0_7 = arith.constant 0 : index
    %9 = vector.load %arg4[%c0_6, %c0_7] : memref<64x128xbf16, #tpu.memory_space<vmem>>, vector<64x128xbf16>
    %cst_8 = arith.constant dense<0.000000e+00> : vector<64x128xf32>
    %10 = tpu.matmul %9, %8, %cst_8 {dimension_numbers = #tpu.dot_dimension_numbers<[1], [0], [0], [1], [0, 0, 1, 1], [], []>} : vector<64x128xbf16>, vector<128x128xbf16>, vector<64x128xf32> -> vector<64x128xf32>
    %c0_9 = arith.constant 0 : index
    %c0_10 = arith.constant 0 : index
    %11 = vector.load %arg5[%c0_9, %c0_10] : memref<64x1xf32, #tpu.memory_space<vmem>>, vector<64x1xf32>
    %12 = vector.broadcast %11 : vector<64x1xf32> to vector<64x128xf32>
    %13 = arith.addf %10, %12 : vector<64x128xf32>
    %cst_11 = arith.constant 0.000000e+00 : f32
    %14 = vector.broadcast %cst_11 : f32 to vector<64x128xf32>
    %15 = arith.maximumf %13, %14 : vector<64x128xf32>
    %16 = arith.truncf %15 : vector<64x128xf32> to vector<64x128xbf16>
    %c0_12 = arith.constant 0 : index
    %c0_13 = arith.constant 0 : index
    %17 = vector.load %arg6[%c0_12, %c0_13] : memref<32x64xbf16, #tpu.memory_space<vmem>>, vector<32x64xbf16>
    %cst_14 = arith.constant dense<0.000000e+00> : vector<32x128xf32>
    %18 = tpu.matmul %17, %16, %cst_14 {dimension_numbers = #tpu.dot_dimension_numbers<[1], [0], [0], [1], [0, 0, 1, 1], [], []>} : vector<32x64xbf16>, vector<64x128xbf16>, vector<32x128xf32> -> vector<32x128xf32>
    %c0_15 = arith.constant 0 : index
    %c0_16 = arith.constant 0 : index
    %19 = vector.load %arg7[%c0_15, %c0_16] : memref<32x1xf32, #tpu.memory_space<vmem>>, vector<32x1xf32>
    %20 = vector.broadcast %19 : vector<32x1xf32> to vector<32x128xf32>
    %21 = arith.addf %18, %20 : vector<32x128xf32>
    %cst_17 = arith.constant 0.000000e+00 : f32
    %22 = vector.broadcast %cst_17 : f32 to vector<32x128xf32>
    %23 = arith.maximumf %21, %22 : vector<32x128xf32>
    %c0_18 = arith.constant 0 : index
    %c0_19 = arith.constant 0 : index
    %24 = vector.load %arg8[%c0_18, %c0_19] : memref<32x1xf32, #tpu.memory_space<vmem>>, vector<32x1xf32>
    %25 = vector.broadcast %24 : vector<32x1xf32> to vector<32x128xf32>
    %26 = arith.mulf %23, %25 : vector<32x128xf32>
    %cst_20 = arith.constant dense<0.000000e+00> : vector<128xf32>
    %27 = vector.multi_reduction <add>, %26, %cst_20 [0] : vector<32x128xf32> to vector<128xf32>
    %28 = vector.shape_cast %27 : vector<128xf32> to vector<1x128xf32>
    %c0_21 = arith.constant 0 : index
    %29 = memref.load %arg9[%c0_21] : memref<1xf32, #tpu.memory_space<smem>>
    %30 = vector.broadcast %29 : f32 to vector<1x128xf32>
    %31 = arith.addf %28, %30 : vector<1x128xf32>
    %c0_22 = arith.constant 0 : index
    %c0_23 = arith.constant 0 : index
    %32 = vector.load %arg10[%c0_22, %c0_23] : memref<1x128xf32, #tpu.memory_space<vmem>>, vector<1x128xf32>
    tpu.vector_store %arg10[%c0_22, %c0_23], %31 {strides = array<i32>} : memref<1x128xf32, #tpu.memory_space<vmem>>, vector<1x128xf32>,
    return
  }
  func.func @transform_0(%arg0: i32) -> (i32, i32) {
    %c0_i32 = arith.constant 0 : i32
    %c0_i32_0 = arith.constant 0 : i32
    return %c0_i32, %arg0 : i32, i32
  }
  func.func @transform_1(%arg0: i32) -> (i32, i32) {
    %c0_i32 = arith.constant 0 : i32
    %c0_i32_0 = arith.constant 0 : i32
    %c0_i32_1 = arith.constant 0 : i32
    return %c0_i32, %c0_i32_0 : i32, i32
  }
  func.func @transform_2(%arg0: i32) -> (i32, i32) {
    %c0_i32 = arith.constant 0 : i32
    %c0_i32_0 = arith.constant 0 : i32
    %c0_i32_1 = arith.constant 0 : i32
    return %c0_i32, %c0_i32_0 : i32, i32
  }
  func.func @transform_3(%arg0: i32) -> (i32, i32) {
    %c0_i32 = arith.constant 0 : i32
    %c0_i32_0 = arith.constant 0 : i32
    %c0_i32_1 = arith.constant 0 : i32
    return %c0_i32, %c0_i32_0 : i32, i32
  }
  func.func @transform_4(%arg0: i32) -> (i32, i32) {
    %c0_i32 = arith.constant 0 : i32
    %c0_i32_0 = arith.constant 0 : i32
    %c0_i32_1 = arith.constant 0 : i32
    return %c0_i32, %c0_i32_0 : i32, i32
  }
  func.func @transform_5(%arg0: i32) -> (i32, i32) {
    %c0_i32 = arith.constant 0 : i32
    %c0_i32_0 = arith.constant 0 : i32
    %c0_i32_1 = arith.constant 0 : i32
    return %c0_i32, %c0_i32_0 : i32, i32
  }
  func.func @transform_6(%arg0: i32) -> (i32, i32) {
    %c0_i32 = arith.constant 0 : i32
    %c0_i32_0 = arith.constant 0 : i32
    %c0_i32_1 = arith.constant 0 : i32
    return %c0_i32, %c0_i32_0 : i32, i32
  }
  func.func @transform_7(%arg0: i32) -> (i32, i32) {
    %c0_i32 = arith.constant 0 : i32
    %c0_i32_0 = arith.constant 0 : i32
    %c0_i32_1 = arith.constant 0 : i32
    return %c0_i32, %c0_i32_0 : i32, i32
  }
  func.func @transform_8(%arg0: i32) -> i32 {
    %c0_i32 = arith.constant 0 : i32
    %c0_i32_0 = arith.constant 0 : i32
    return %c0_i32 : i32
  }
  func.func @transform_9(%arg0: i32) -> (i32, i32) {
    %c0_i32 = arith.constant 0 : i32
    %c0_i32_0 = arith.constant 0 : i32
    return %c0_i32, %arg0 : i32, i32
  }
}

</mosaic_0001>

<bundles_post_ra>
// kernel: tpu_custom_call.1
= control target key start
LH: loop header
LB: loop body
LE: loop exit
PB: predicated region body
PF: predicated region fallthrough
CT: control target
= control target key end

     0   :  { %vm213_vm0 = vcmask 1043456   ;;  %v656_v3 = vmov 0   ;;  %vm188_vm1 = vcmask 64512   ;;  %s867_s0 = inlined_call_operand.vmem [shape: bf16[8,128], index: 0, kind: input, shape index: {}]   ;;  %s868_s1 = inlined_call_operand.vmem [shape: bf16[128,8], index: 1, kind: input, shape index: {}]   ;;  %s869_s2 = inlined_call_operand.vmem [shape: f32[128,1], index: 2, kind: input, shape index: {}]   ;;  %s870_s3 = inlined_call_operand.vmem [shape: bf16[64,128], index: 3, kind: input, shape index: {}]   ;;  %s871_s4 = inlined_call_operand.vmem [shape: f32[64,1], index: 4, kind: input, shape index: {}]   ;;  %s872_s5 = inlined_call_operand.vmem [shape: bf16[32,64], index: 5, kind: input, shape index: {}]   ;;  %s873_s6 = inlined_call_operand.vmem [shape: f32[32,1], index: 6, kind: input, shape index: {}]   ;;  %s874_s7 = inlined_call_operand.vmem [shape: f32[32,1], index: 7, kind: input, shape index: {}]   ;;  %s875_s8 = inlined_call_operand.<no memory space> [shape: f32[1], index: 8, kind: input, shape index: {}]   ;;  %s876_s9 = inlined_call_operand.hbm [shape: f32[1,128], index: 9, kind: output, shape index: {}]  }
   0x1   :  { %v66_v0 = vld [vmem:[%s869_s2 + $0x70] sm:$0xff]  ;;  %v64_v1 = vld [vmem:[%s869_s2 + $0x60] sm:$0xff]  ;;  %628 = vset.pattern.permute.xlu1 %v656_v3  ;;  %627 = vset.pattern.permute.xlu0 %v656_v3  ;;  %v607_v6 = vld [vmem:[%s868_s1 + $0x28] sm:$0xff] }
   0x2   :  { %v35_v2 = vld [vmem:[%s867_s0] sm:$0xf]  ;;  %140 = vperm.xlu0 %627, %v66_v0   ;;  %130 = vperm.xlu1 %628, %v64_v1   ;;  %v62_v7 = vld [vmem:[%s869_s2 + $0x50] sm:$0xff]  ;;  %v67_v8 = vld [vmem:[%s869_s2 + $0x78] sm:$0xff] }
   0x3   :  { %v215_v4 = vsel %vm213_vm0, %v35_v2, 0  ;;  %v602_v5 = vld [vmem:[%s868_s1] sm:$0xff]  ;;  %629 = vset.pattern.permute.xlu2 %v656_v3  ;;  %v65_v9 = vld [vmem:[%s869_s2 + $0x68] sm:$0xff] }
   0x4   :  { %224 = vmatpush.bf16.msra.mxu0 %v215_v4  ;;  %616 = vmatpush.bf16.msra.mxu3 %v215_v4 }
   0x5   :  { %120 = vperm.xlu2 %629, %v62_v7  }
   0x7   :  { %568 = vmatmul.msk.bf16.vlgmr.msra.gmra.mxu0 %vm188_vm1, %v602_v5  ;;  %573 = vmatmul.msk.bf16.vlgmr.msra.gmra.mxu3 %vm188_vm1, %v607_v6 }
   0x8   :  { %15 = vsyncpa [#allocation4], 0  ;;  %v63_v10 = vld [vmem:[%s869_s2 + $0x58] sm:$0xff]  ;;  %v61_v11 = vld [vmem:[%s869_s2 + $0x48] sm:$0xff]  ;;  %vm449_vm2 = vcmask 523264   ;;  %s657_s30 = smov [#allocation3]  }
   0x9   :  { %v60_v12 = vld [vmem:[%s869_s2 + $0x40] sm:$0xff]  ;;  %v603_v13 = vld [vmem:[%s868_s1 + $0x8] sm:$0xff]  ;;  %v608_v14 = vld [vmem:[%s868_s1 + $0x30] sm:$0xff]  ;;  %s525_s10 = sshll.u32 %s657_s30, 4  ;;  %s527_s13 = sshll.u32 %s876_s9, 4  ;;  %s526_s10 = int_to_ptr.vmem [resolvable:$true] %s525_s10  ;;  %s528_s13 = int_to_ptr.hbm [resolvable:$true] %s527_s13 }
   0xa   :  { %145 = vperm.xlu0 %627, %v67_v8   ;;  %135 = vperm.xlu1 %628, %v65_v9   ;;  %v58_v15 = vld [vmem:[%s869_s2 + $0x30] sm:$0xff]  ;;  %v59_v16 = vld [vmem:[%s869_s2 + $0x38] sm:$0xff]  ;;  %v56_v17 = vld [vmem:[%s869_s2 + $0x20] sm:$0xff] }
   0xb   :  { %v57_v18 = vld [vmem:[%s869_s2 + $0x28] sm:$0xff]  ;;  %v55_v19 = vld [vmem:[%s869_s2 + $0x18] sm:$0xff]  ;;  %v54_v20 = vld [vmem:[%s869_s2 + $0x10] sm:$0xff] }
   0xc   :  { %v604_v21 = vld [vmem:[%s868_s1 + $0x10] sm:$0xff]  ;;  %v609_v22 = vld [vmem:[%s868_s1 + $0x38] sm:$0xff]  ;;  %v52_v23 = vld [vmem:[%s869_s2] sm:$0xff] }
   0xd   :  { %125 = vperm.xlu2 %629, %v63_v10   ;;  %v304_v24 = vld [vmem:[%s871_s4 + $0x30] sm:$0xff]  ;;  %v53_v25 = vld [vmem:[%s869_s2 + $0x8] sm:$0xff]  ;;  %v305_v26 = vld [vmem:[%s871_s4 + $0x38] sm:$0xff] }
   0xe   :  { %v303_v27 = vld [vmem:[%s871_s4 + $0x28] sm:$0xff]  ;;  %v302_v28 = vld [vmem:[%s871_s4 + $0x20] sm:$0xff]  ;;  %v605_v29 = vld [vmem:[%s868_s1 + $0x18] sm:$0xff] }
   0xf   :  { %v300_v30 = vld [vmem:[%s871_s4 + $0x10] sm:$0xff]  ;;  %v298_v31 = vld [vmem:[%s871_s4] sm:$0xff]  ;;  %v301_v32 = vld [vmem:[%s871_s4 + $0x18] sm:$0xff] }
  0x10   :  { %v299_v33 = vld [vmem:[%s871_s4 + $0x8] sm:$0xff]  ;;  %v415_v35 = vld [vmem:[%s873_s6] sm:$0xff]  ;;  %v417_v37 = vld [vmem:[%s873_s6 + $0x10] sm:$0xff] }
  0x11   :  { %v416_v34 = vld [vmem:[%s873_s6 + $0x8] sm:$0xff]  ;;  %v606_v36 = vld [vmem:[%s868_s1 + $0x20] sm:$0xff]  ;;  %v418_v39 = vld [vmem:[%s873_s6 + $0x18] sm:$0xff] }
  0x12   :  { %115 = vperm.xlu1 %628, %v61_v11   ;;  %110 = vperm.xlu0 %627, %v60_v12   ;;  %v479_v38 = vld [vmem:[%s874_s7] sm:$0xff]  ;;  %v480_v40 = vld [vmem:[%s874_s7 + $0x8] sm:$0xff]  ;;  %v482_v41 = vld [vmem:[%s874_s7 + $0x18] sm:$0xff] }
  0x13   :  { %v481_v42 = vld [vmem:[%s874_s7 + $0x10] sm:$0xff] }
  0x15   :  { %100 = vperm.xlu2 %629, %v58_v15  }
  0x17   :  { %569 = vmatmul.msk.bf16.gmra.mxu0 %vm188_vm1, %v603_v13  ;;  %574 = vmatmul.msk.bf16.gmra.mxu3 %vm188_vm1, %v608_v14 }
  0x1a   :  { %105 = vperm.xlu0 %627, %v59_v16   ;;  %90 = vperm.xlu1 %628, %v56_v17  }
  0x1d   :  { %95 = vperm.xlu2 %629, %v57_v18  }
  0x22   :  { %85 = vperm.xlu1 %628, %v55_v19   ;;  %80 = vperm.xlu0 %627, %v54_v20  }
  0x25   :  { %70 = vperm.xlu2 %629, %v52_v23  }
  0x27   :  { %570 = vmatmul.msk.bf16.gmra.mxu0 %vm188_vm1, %v604_v21  ;;  %575 = vmatmul.msk.bf16.gmra.mxu3 %vm188_vm1, %v609_v22 }
  0x2a   :  { %338 = vperm.xlu1 %628, %v304_v24   ;;  %75 = vperm.xlu0 %627, %v53_v25  }
  0x2d   :  { %343 = vperm.xlu2 %629, %v305_v26  }
  0x32   :  { %333 = vperm.xlu1 %628, %v303_v27   ;;  %328 = vperm.xlu0 %627, %v302_v28  }
  0x35   :  { %318 = vperm.xlu2 %629, %v300_v30  }
  0x37   :  { %571 = vmatmul.msk.bf16.gmra.mxu0 %vm188_vm1, %v605_v29 }
  0x3a   :  { %308 = vperm.xlu1 %628, %v298_v31   ;;  %323 = vperm.xlu0 %627, %v301_v32  }
  0x3d   :  { %313 = vperm.xlu2 %629, %v299_v33  }
  0x42   :  { %426 = vperm.xlu1 %628, %v416_v34   ;;  %421 = vperm.xlu0 %627, %v415_v35  }
  0x45   :  { %431 = vperm.xlu2 %629, %v417_v37  }
  0x47   :  { %572 = vmatmul.msk.bf16.gmra.mxu0 %vm188_vm1, %v606_v36 }
  0x4a   :  { %485 = vperm.xlu1 %628, %v479_v38   ;;  %436 = vperm.xlu0 %627, %v418_v39  }
  0x4d   :  { %490 = vperm.xlu2 %629, %v480_v40  }
  0x52   :  { %500 = vperm.xlu1 %628, %v482_v41   ;;  %495 = vperm.xlu0 %627, %v481_v42  }
  0x5f   :  { %v121_v43 = vpop.permute.xlu2 %120 }
  0x67   :  { %v126_v45 = vpop.permute.xlu2 %125 }
  0x6f   :  { %v101_v48 = vpop.permute.xlu2 %100 }
  0x74   :  { %v141_v44 = vpop.permute.xlu0 %140  ;;  %v131_v4 = vpop.permute.xlu1 %130 }
  0x77   :  { %v96_v53 = vpop.permute.xlu2 %95 }
  0x7c   :  { %v146_v46 = vpop.permute.xlu0 %145  ;;  %v136_v8 = vpop.permute.xlu1 %135 }
  0x7f   :  { %v71_v57 = vpop.permute.xlu2 %70 }
  0x84   :  { %v226_v47 = vpop.f32.mrf.mxu0  ;;  %v111_v49 = vpop.permute.xlu0 %110 }
  0x85   :  { %v227_v59 = vadd.f32 %v226_v47, %v71_v57  ;;  %v116_v26 = vpop.permute.xlu1 %115 }
  0x87   :  { %v266_v63 = vmax.f32 %v227_v59, 0.0 }
  0x8a   :  { %v251_v50 = vpop.f32.mrf.mxu3 }
  0x8b   :  { %v252_v16 = vadd.f32 %v251_v50, %v121_v43 }
  0x8c   :  { %v228_v51 = vpop.f32.mrf.mxu0  ;;  %v106_v52 = vpop.permute.xlu0 %105 }
  0x8d   :  { %v276_v21 = vmax.f32 %v252_v16, 0.0  ;;  %v91_v28 = vpop.permute.xlu1 %90 }
  0x92   :  { %v253_v54 = vpop.f32.mrf.mxu3 }
  0x93   :  { %v254_v17 = vadd.f32 %v253_v54, %v126_v45  ;;  %v612_v54 = vld [vmem:[%s870_s3 + $0x10] sm:$0xff] }
  0x94   :  { %v231_v55 = vpop.f32.mrf.mxu0  ;;  %v81_v56 = vpop.permute.xlu0 %80 }
  0x95   :  { %v277_v22 = vmax.f32 %v254_v17, 0.0  ;;  %v86_v41 = vpop.permute.xlu1 %85  ;;  %v232_v45 = vadd.f32 %v231_v55, %v81_v56 }
  0x97   :  { %v287_v25 = vpack.c.bf16 %v277_v22, %v276_v21 }
  0x9a   :  { %v256_v58 = vpop.f32.mrf.mxu3 }
  0x9b   :  { %v257_v10 = vadd.f32 %v256_v58, %v131_v4 }
  0x9c   :  { %v233_v60 = vpop.f32.mrf.mxu0  ;;  %v76_v61 = vpop.permute.xlu0 %75 }
  0x9d   :  { %v229_v62 = vadd.f32 %v228_v51, %v76_v61  ;;  %v278_v18 = vmax.f32 %v257_v10, 0.0  ;;  %v234_v42 = vadd.f32 %v233_v60, %v86_v41  ;;  %v610_v51 = vld [vmem:[%s870_s3] sm:$0xff]  ;;  %v339_v58 = vpop.permute.xlu1 %338  ;;  %v344_v60 = vpop.permute.xlu2 %343 }
  0x9f   :  { %v267_v0 = vmax.f32 %v229_v62, 0.0  ;;  %v269_v47 = vmax.f32 %v234_v42, 0.0 }
  0xa1   :  { %v839_v2 = vpack.c.bf16 %v267_v0, %v266_v63 }
  0xa2   :  { %v258_v1 = vpop.f32.mrf.mxu3 }
  0xa3   :  { %v259_v11 = vadd.f32 %v258_v1, %v136_v8 }
  0xa4   :  { %v236_v3 = vpop.f32.mrf.mxu0  ;;  %v329_v4 = vpop.permute.xlu0 %328 }
  0xa5   :  { %v279_v19 = vmax.f32 %v259_v11, 0.0  ;;  %v237_v39 = vadd.f32 %v236_v3, %v91_v28  ;;  %v615_v28 = vld [vmem:[%s872_s5 + $0x8] sm:$0xff] }
  0xa7   :  { %v288_v23 = vpack.c.bf16 %v279_v19, %v278_v18 }
  0xaa   :  { %v261_v5 = vpop.f32.mrf.mxu3 }
  0xab   :  { %v262_v7 = vadd.f32 %v261_v5, %v141_v44 }
  0xac   :  { %v238_v6 = vpop.f32.mrf.mxu0 }
  0xad   :  { %v280_v12 = vmax.f32 %v262_v7, 0.0  ;;  %v239_v36 = vadd.f32 %v238_v6, %v96_v53  ;;  %v611_v53 = vld [vmem:[%s870_s3 + $0x8] sm:$0xff]  ;;  %v319_v6 = vpop.permute.xlu2 %318  ;;  %v334_v7 = vpop.permute.xlu1 %333 }
  0xaf   :  { %v271_v43 = vmax.f32 %v239_v36, 0.0 }
  0xb2   :  { %v263_v9 = vpop.f32.mrf.mxu3 }
  0xb3   :  { %v264_v13 = vadd.f32 %v263_v9, %v146_v46  ;;  %v270_v46 = vmax.f32 %v237_v39, 0.0  ;;  %v324_v9 = vpop.permute.xlu0 %323 }
  0xb4   :  { %v241_v14 = vpop.f32.mrf.mxu0 }
  0xb5   :  { %v281_v15 = vmax.f32 %v264_v13, 0.0  ;;  %v242_v33 = vadd.f32 %v241_v14, %v101_v48  ;;  %v268_v48 = vmax.f32 %v232_v45, 0.0  ;;  %v314_v16 = vpop.permute.xlu2 %313 }
  0xb7   :  { %v289_v20 = vpack.c.bf16 %v281_v15, %v280_v12  ;;  %v272_v40 = vmax.f32 %v242_v33, 0.0  ;;  %v283_v50 = vpack.c.bf16 %v269_v47, %v268_v48 }
  0xb9   :  { %370 = vmatpush.bf16.msra.mxu1 %v289_v20  ;;  %617 = vmatpush.bf16.msra.mxu2 %v289_v20  ;;  %v309_v20 = vpop.permute.xlu1 %308 }
  0xbc   :  { %v243_v24 = vpop.f32.mrf.mxu0 }
  0xbd   :  { %371 = vmatpush.bf16.msra.mxu1 %v288_v23  ;;  %618 = vmatpush.bf16.msra.mxu2 %v288_v23  ;;  %v244_v31 = vadd.f32 %v243_v24, %v106_v52  ;;  %v613_v52 = vld [vmem:[%s870_s3 + $0x18] sm:$0xff]  ;;  %v432_v33 = vpop.permute.xlu2 %431 }
  0xbf   :  { %v273_v37 = vmax.f32 %v244_v31, 0.0 }
  0xc1   :  { %372 = vmatpush.bf16.msra.mxu1 %v287_v25  ;;  %619 = vmatpush.bf16.msra.mxu2 %v287_v25  ;;  %v285_v44 = vpack.c.bf16 %v273_v37, %v272_v40  ;;  %v427_v31 = vpop.permute.xlu1 %426 }
  0xc4   :  { %v246_v27 = vpop.f32.mrf.mxu0 }
  0xc5   :  { %v247_v29 = vadd.f32 %v246_v27, %v111_v49  ;;  %v284_v49 = vpack.c.bf16 %v271_v43, %v270_v46  ;;  %v614_v27 = vld [vmem:[%s872_s5] sm:$0xff]  ;;  %v491_v43 = vpop.permute.xlu2 %490 }
  0xc7   :  { %v274_v34 = vmax.f32 %v247_v29, 0.0 }
  0xc9   :  { %v486_v39 = vpop.permute.xlu1 %485 }
  0xcc   :  { %v248_v30 = vpop.f32.mrf.mxu0 }
  0xcd   :  { %v249_v32 = vadd.f32 %v248_v30, %v116_v26  ;;  %v422_v30 = vpop.permute.xlu0 %421 }
  0xcf   :  { %v275_v35 = vmax.f32 %v249_v32, 0.0 }
  0xd1   :  { %v286_v38 = vpack.c.bf16 %v275_v35, %v274_v34 }
  0xd3   :  { %373 = vmatpush.bf16.msra.mxu1 %v286_v38  ;;  %620 = vmatpush.bf16.msra.mxu2 %v286_v38 }
  0xd5   :  { %v437_v34 = vpop.permute.xlu0 %436 }
  0xd7   :  { %374 = vmatpush.bf16.msra.mxu1 %v285_v44  ;;  %621 = vmatpush.bf16.msra.mxu2 %v285_v44 }
  0xdb   :  { %375 = vmatpush.bf16.msra.mxu1 %v284_v49  ;;  %622 = vmatpush.bf16.msra.mxu2 %v284_v49 }
  0xdd   :  { %v496_v45 = vpop.permute.xlu0 %495 }
  0xdf   :  { %376 = vmatpush.bf16.msra.mxu1 %v283_v50  ;;  %623 = vmatpush.bf16.msra.mxu2 %v283_v50 }
  0xe3   :  { %377 = vmatpush.bf16.msra.mxu1 %v839_v2  ;;  %624 = vmatpush.bf16.msra.mxu2 %v839_v2 }
  0xe6   :  { %378 = vmatmul.bf16.vlgmr.msra.gmra.mxu1 %v610_v51  ;;  %393 = vmatmul.bf16.vlgmr.msra.gmra.mxu2 %v613_v52  ;;  %v501_v52 = vpop.permute.xlu1 %500 }
  0xf6   :  { %383 = vmatmul.bf16.gmra.mxu1 %v611_v53 }
 0x106   :  { %388 = vmatmul.bf16.gmra.mxu1 %v612_v54 }
 0x163   :  { %v379_v55 = vpop.f32.mrf.mxu1 }
 0x164   :  { %v380_v21 = vadd.f32 %v379_v55, %v309_v20 }
 0x166   :  { %v399_v25 = vmax.f32 %v380_v21, 0.0 }
 0x169   :  { %v394_v56 = vpop.f32.mrf.mxu2 }
 0x16a   :  { %v395_v59 = vadd.f32 %v394_v56, %v339_v58 }
 0x16b   :  { %v381_v57 = vpop.f32.mrf.mxu1 }
 0x16c   :  { %v405_v0 = vmax.f32 %v395_v59, 0.0  ;;  %v382_v17 = vadd.f32 %v381_v57, %v314_v16 }
 0x16e   :  { %v400_v23 = vmax.f32 %v382_v17, 0.0 }
 0x170   :  { %v407_v26 = vpack.c.bf16 %v400_v23, %v399_v25 }
 0x171   :  { %v396_v61 = vpop.f32.mrf.mxu2 }
 0x172   :  { %v397_v62 = vadd.f32 %v396_v61, %v344_v60  ;;  %v517_v61 = vstv %s875_s8 }
 0x173   :  { %v384_v63 = vpop.f32.mrf.mxu1 }
 0x174   :  { %v406_v1 = vmax.f32 %v397_v62, 0.0  ;;  %v385_v13 = vadd.f32 %v384_v63, %v319_v6 }
 0x176   :  { %v410_v2 = vpack.c.bf16 %v406_v1, %v405_v0  ;;  %v401_v22 = vmax.f32 %v385_v13, 0.0 }
 0x178   :  { %460 = vmatpush.bf16.msrb.mxu2 %v410_v2 }
 0x17b   :  { %v386_v3 = vpop.f32.mrf.mxu1 }
 0x17c   :  { %v387_v11 = vadd.f32 %v386_v3, %v324_v9 }
 0x17e   :  { %v402_v18 = vmax.f32 %v387_v11, 0.0 }
 0x180   :  { %v408_v24 = vpack.c.bf16 %v402_v18, %v401_v22 }
 0x183   :  { %v389_v5 = vpop.f32.mrf.mxu1 }
 0x184   :  { %v390_v8 = vadd.f32 %v389_v5, %v329_v4 }
 0x186   :  { %v403_v14 = vmax.f32 %v390_v8, 0.0 }
 0x18b   :  { %v391_v10 = vpop.f32.mrf.mxu1 }
 0x18c   :  { %v392_v12 = vadd.f32 %v391_v10, %v334_v7 }
 0x18e   :  { %v404_v15 = vmax.f32 %v392_v12, 0.0 }
 0x190   :  { %v409_v19 = vpack.c.bf16 %v404_v15, %v403_v14 }
 0x192   :  { %461 = vmatpush.bf16.msrb.mxu2 %v409_v19 }
 0x196   :  { %462 = vmatpush.bf16.msrb.mxu2 %v408_v24 }
 0x19a   :  { %463 = vmatpush.bf16.msrb.mxu2 %v407_v26 }
 0x19d   :  { %600 = vmatmul.msk.bf16.vlgmr.msrb.gmra.mxu2 %vm449_vm2, %v614_v27 }
 0x1ad   :  { %601 = vmatmul.msk.bf16.gmra.mxu2 %vm449_vm2, %v615_v28 }
 0x220   :  { %v465_v29 = vpop.f32.mrf.mxu2 }
 0x221   :  { %v466_v37 = vadd.f32 %v465_v29, %v422_v30 }
 0x223   :  { %v475_v41 = vmax.f32 %v466_v37, 0.0 }
 0x225   :  { %v503_v47 = vmul.f32 %v486_v39, %v475_v41 }
 0x228   :  { %v467_v32 = vpop.f32.mrf.mxu2 }
 0x229   :  { %v468_v35 = vadd.f32 %v467_v32, %v427_v31 }
 0x22b   :  { %v476_v40 = vmax.f32 %v468_v35, 0.0 }
 0x22d   :  { %v504_v44 = vmul.f32 %v491_v43, %v476_v40 }
 0x22f   :  { %v507_v50 = vadd.f32 %v504_v44, %v503_v47 }
 0x230   :  { %v470_v36 = vpop.f32.mrf.mxu2 }
 0x231   :  { %v471_v38 = vadd.f32 %v470_v36, %v432_v33 }
 0x233   :  { %v477_v42 = vmax.f32 %v471_v38, 0.0 }
 0x235   :  { %v505_v49 = vmul.f32 %v496_v45, %v477_v42 }
 0x237   :  { %v508_v53 = vadd.f32 %v507_v50, %v505_v49 }
 0x238   :  { %v472_v46 = vpop.f32.mrf.mxu2 }
 0x239   :  { %v473_v48 = vadd.f32 %v472_v46, %v437_v34 }
 0x23b   :  { %v478_v51 = vmax.f32 %v473_v48, 0.0 }
 0x23d   :  { %v506_v54 = vmul.f32 %v501_v52, %v478_v51 }
 0x23f   :  { %v509_v55 = vadd.f32 %v508_v53, %v506_v54 }
 0x241   :  { %v510_v56 = vrot.slane %v509_v55, 4 }
 0x243   :  { %v511_v57 = vadd.f32 %v510_v56, %v509_v55 }
 0x245   :  { %v512_v58 = vrot.slane %v511_v57, 2 }
 0x247   :  { %v513_v59 = vadd.f32 %v512_v58, %v511_v57 }
 0x249   :  { %v514_v60 = vrot.slane %v513_v59, 1 }
 0x24b   :  { %v515_v62 = vadd.f32 %v514_v60, %v513_v59 }
 0x24d   :  { %v518_v63 = vadd.f32 %v517_v61, %v515_v62 }
 0x24f   :  { %519 = vst [vmem:[#allocation3] sm:$0x1] %v518_v63 }
 0x250   :  { %530 = dma.vmem_to_hbm [thread:$0]  %s526_s10, 16, %s528_s13, [#allocation4]  }
 0x251   :  { %654 = dma.done.wait [#allocation4], 16  }
 0x252   :  { %655 = vsyncadd [#allocation4], 4294967280 }
 0x253   :  { %535 = vsyncpa [#allocation4], 1 }

</bundles_post_ra>
